<compile_context>
chip_gen: v7x
topology: tpu7x:2x2x1
jax: 0.10.0
libtpu: 0.0.40
codegen_flags: <defaults>
</compile_context>

<pallas_src>
import functools

import jax
import jax.numpy as jnp
from jax import lax
from jax.experimental import pallas as pl
from jax.experimental.pallas import tpu as pltpu


def _round_up(n, m):
    return ((n + m - 1) // m) * m


def _cdiv(a, b):
    return (a + b - 1) // b


# -----------------------------------------------------------------------------
# Kernel
# -----------------------------------------------------------------------------
def gru_unit_kernel(
    yy_ref,    # (tm, 2L)   packed [y_mean | y_std]
    x_ref,     # (tm, D)
    w1_ref,    # (2L+D, 3H) fused first layer: [update-H | reset-H | x-part of new_state-H]
    b1_ref,    # (1, 3H)
    w2g_ref,   # (2H, 2L)   block-diagonal gate second layer -> [u | r]
    b2g_ref,   # (1, 2L)
    nw1_ref,   # (2L, H)    ym/ys rows of new_state_net first layer
    nw2_ref,   # (H, 2L)    new_state_net second layer -> [state | state_std]
    nb2_ref,   # (1, 2L)
    out_ref,   # (tm, 2L)   packed [new_y | new_y_std]
):
    f32 = jnp.float32
    twoL = yy_ref.shape[-1]
    L = twoL // 2
    D = x_ref.shape[-1]
    twoH = w2g_ref.shape[0]
    wdt = w1_ref.dtype          # matmul operand dtype (f32 or bf16); accumulate f32

    yy = yy_ref[...].astype(f32)                     # packed state, lane-dense
    x = x_ref[...].astype(f32)

    def mm(a, w):
        return jnp.dot(a.astype(wdt), w, preferred_element_type=f32)

    # Fused first layer, no concat: static sublane slices of the weight ref.
    # Columns [2H:3H] carry the x-only contribution of new_state_net's first
    # layer (zero rows for ym/ys), so it runs off the gate critical path.
    pre = mm(yy, w1_ref[:twoL, :]) + mm(x, w1_ref[twoL:, :]) + b1_ref[...]   # (tm, 3H)
    h_ur = jnp.tanh(pre[:, :twoH])                   # (tm, 2H) gate hidden
    x_contrib = pre[:, twoH:]                        # (tm, H), already includes n_b1

    # Block-diagonal fused gate second layer -> gates = [update | reset].
    # (Keep fused only while 2H <= 256 and 2L <= 256; split into two (H, L)
    # matmuls beyond that to avoid paying for the structural zeros.)
    gates = jax.nn.sigmoid(mm(h_ur, w2g_ref[...]) + b2g_ref[...])            # (tm, 2L)

    # Duplicate each gate half across the full 2L lanes: XLU roll + VPU select.
    lane = lax.broadcasted_iota(jnp.int32, gates.shape, 1)
    lo = lane < L                                    # True on the y_mean half
    rolled = pltpu.roll(gates, shift=L, axis=1)      # [r | u]
    r_dup = jnp.where(lo, rolled, gates)             # [r | r]
    u_dup = jnp.where(lo, gates, rolled)             # [u | u]

    # new_state_net on cat([y_mean*r, y_std*r, x]) without materializing the cat.
    hn = jnp.tanh(mm(yy * r_dup, nw1_ref[...]) + x_contrib)                  # (tm, H)
    ns = mm(hn, nw2_ref[...]) + nb2_ref[...]                                 # (tm, 2L)
    ns = jnp.where(lo, ns, jnp.abs(ns))              # abs() on the std half

    # Packed GRU blend against packed [y_mean | y_std].
    blended = (1.0 - u_dup) * ns + u_dup * yy

    # masked_update (module default): update a row only if any observation-mask
    # bit (second half of x) is set.
    obs = (jnp.sum(x[:, D // 2:], axis=-1, keepdims=True) > 0).astype(f32)
    out = obs * blended + (1.0 - obs) * yy
    out = jnp.where(lo, out, jnp.abs(out))           # final .abs() on new_y_std

    # TODO(synk): torch.isnan asserts / debug prints / exit() are host-side
    # checks with no in-kernel equivalent; omitted.
    out_ref[...] = out.astype(out_ref.dtype)


# -----------------------------------------------------------------------------
# Parameters
# -----------------------------------------------------------------------------
def init_params(key, latent_dim, input_dim, n_units):
    """Natural (per-gate) weights, N(0, 0.1).  utils.init_network_weights would
    zero the biases; random biases are used here to exercise the bias paths
    (the module also accepts user-provided gate nets with arbitrary biases)."""
    L, D, H = latent_dim, input_dim, n_units
    ks = jax.random.split(key, 12)
    n01 = lambda k, s: jax.random.normal(k, s, jnp.float32) * 0.1
    return dict(
        u_w1=n01(ks[0], (2 * L + D, H)), u_b1=n01(ks[1], (H,)),
        u_w2=n01(ks[2], (H, L)),         u_b2=n01(ks[3], (L,)),
        r_w1=n01(ks[4], (2 * L + D, H)), r_b1=n01(ks[5], (H,)),
        r_w2=n01(ks[6], (H, L)),         r_b2=n01(ks[7], (L,)),
        n_w1=n01(ks[8], (2 * L + D, H)), n_b1=n01(ks[9], (H,)),
        n_w2=n01(ks[10], (H, 2 * L)),    n_b2=n01(ks[11], (2 * L,)),
    )


def pack_params(nat, latent_dim, input_dim, n_units):
    """Build the fused kernel layout from natural per-gate weights."""
    L, D, H = latent_dim, input_dim, n_units
    f32 = jnp.float32

    # Fused first layer: columns [update-H | reset-H | x-part-of-new_state-H].
    w1 = jnp.zeros((2 * L + D, 3 * H), f32)
    w1 = w1.at[:, :H].set(nat["u_w1"])
    w1 = w1.at[:, H:2 * H].set(nat["r_w1"])
    w1 = w1.at[2 * L:, 2 * H:].set(nat["n_w1"][2 * L:])
    b1 = jnp.concatenate([nat["u_b1"], nat["r_b1"], nat["n_b1"]]).reshape(1, 3 * H)

    # Block-diagonal gate second layer -> [u | r].
    w2g = jnp.zeros((2 * H, 2 * L), f32)
    w2g = w2g.at[:H, :L].set(nat["u_w2"]).at[H:, L:].set(nat["r_w2"])
    b2g = jnp.concatenate([nat["u_b2"], nat["r_b2"]]).reshape(1, 2 * L)

    nw1 = nat["n_w1"][:2 * L]            # ym/ys rows only (x rows live in w1)
    nw2 = nat["n_w2"]
    nb2 = nat["n_b2"].reshape(1, 2 * L)
    return (w1, b1, w2g, b2g, nw1, nw2, nb2)


# -----------------------------------------------------------------------------
# Wrappers
# -----------------------------------------------------------------------------
@functools.partial(jax.jit, static_argnames=("compute_dtype", "max_rows_per_step"))
def gru_unit_forward_packed(y_packed, x, kparams,
                            compute_dtype=jnp.float32, max_rows_per_step=1024):
    """Packed-state GRU step: y_packed = [y_mean | y_std] of shape (..., 2L).
    Returns the new packed state with the same shape/dtype.  Keeping the state
    packed between calls avoids any split/concat HBM traffic."""
    assert max_rows_per_step % 256 == 0
    *lead, twoL = y_packed.shape
    D = x.shape[-1]
    M = 1
    for s in lead:
        M *= s

    cdt = jnp.dtype(compute_dtype)
    w1, b1, w2g, b2g, nw1, nw2, nb2 = kparams
    # matmul operands in compute_dtype (bf16 halves weight traffic and runs the
    # MXU at bf16 rate on all of v5e/v6e/v7x); biases stay f32.
    kp = (w1.astype(cdt), b1.astype(jnp.float32),
          w2g.astype(cdt), b2g.astype(jnp.float32),
          nw1.astype(cdt), nw2.astype(cdt), nb2.astype(jnp.float32))

    yy = y_packed.reshape(M, twoL)
    xf = x.reshape(M, D)

    sub = 16 if yy.dtype == jnp.bfloat16 else 8      # sublane tile of the storage dtype
    if M < sub:                                      # pathological tiny batch only
        yy = jnp.pad(yy, ((0, sub - M), (0, 0)))
        xf = jnp.pad(xf, ((0, sub - M), (0, 0)))
    n_rows = max(M, sub)

    # Row tile:
    #  * multiple of 256 once large (fills the v6e/v7x MXU M-dim; >=128 for v5e)
    #  * >= 2 grid steps for large M so v7x megacore uses both TensorCores
    #  * never exceeds the array -> no jnp.pad pass; ragged last tile is clipped
    split2 = _round_up(_cdiv(n_rows, 2), 256)
    fit = (n_rows // sub) * sub
    tm = max(sub, min(max_rows_per_step, split2, fit))
    grid = _cdiv(n_rows, tm)

    row_yy = pl.BlockSpec((tm, twoL), lambda i: (i, 0))
    row_x = pl.BlockSpec((tm, D), lambda i: (i, 0))
    # Constant index_map -> each weight/bias is fetched into VMEM once and
    # reused across all grid steps.
    wspec = lambda p: pl.BlockSpec(p.shape, lambda i: (0, 0))

    out = pl.pallas_call(
        gru_unit_kernel,
        out_shape=jax.ShapeDtypeStruct((n_rows, twoL), y_packed.dtype),
        grid_spec=pltpu.PrefetchScalarGridSpec(
            num_scalar_prefetch=0,
            grid=(grid,),
            in_specs=[row_yy, row_x] + [wspec(p) for p in kp],
            out_specs=pl.BlockSpec((tm, twoL), lambda i: (i, 0)),
        ),
        compiler_params=pltpu.CompilerParams(
            dimension_semantics=("parallel",)),
    )(yy, xf, *kp)

    return out[:M].reshape(*lead, twoL)


def gru_unit_forward(y_mean, y_std, x, kparams, **kwargs):
    """Module-compatible interface (masked_update=True, the module default).
    For best performance keep the state packed and call gru_unit_forward_packed
    directly between successive GRU steps."""
    L = y_mean.shape[-1]
    y_packed = jnp.concatenate([y_mean, y_std], axis=-1)
    out = gru_unit_forward_packed(y_packed, x, kparams, **kwargs)
    return out[..., :L], out[..., L:]


# -----------------------------------------------------------------------------
# Pure-JAX reference mirroring the PyTorch forward (natural weights)
# -----------------------------------------------------------------------------
def gru_unit_reference(y_mean, y_std, x, nat):
    L = y_mean.shape[-1]
    yc = jnp.concatenate([y_mean, y_std, x], axis=-1)
    u = jax.nn.sigmoid(jnp.tanh(yc @ nat["u_w1"] + nat["u_b1"]) @ nat["u_w2"] + nat["u_b2"])
    r = jax.nn.sigmoid(jnp.tanh(yc @ nat["r_w1"] + nat["r_b1"]) @ nat["r_w2"] + nat["r_b2"])
    c = jnp.concatenate([y_mean * r, y_std * r, x], axis=-1)
    ns_all = jnp.tanh(c @ nat["n_w1"] + nat["n_b1"]) @ nat["n_w2"] + nat["n_b2"]
    new_state, new_state_std = ns_all[..., :L], jnp.abs(ns_all[..., L:])
    new_y = (1 - u) * new_state + u * y_mean
    new_y_std = (1 - u) * new_state_std + u * y_std
    d = x.shape[-1]
    mask = (jnp.sum(x[..., d // 2:], axis=-1, keepdims=True) > 0).astype(jnp.float32)
    new_y = mask * new_y + (1 - mask) * y_mean
    new_y_std = mask * new_y_std + (1 - mask) * y_std
    return new_y, jnp.abs(new_y_std)


# -----------------------------------------------------------------------------
if __name__ == "__main__":
    T, B = 4, 7            # n_traj, batch -> M = 28 rows (exercises the clipped
                           # ragged last row tile: grid=(2,), tm=24, no jnp.pad)
    latent_dim = 64        # 2L = 128 -> lane-dense packed state
    n_data_dims = 16
    input_dim = 2 * n_data_dims   # data half + observation-mask half
    n_units = 64           # 2H = 128 -> lane-dense fused gate hidden layer

    key = jax.random.PRNGKey(0)
    k_y, k_s, k_xd, k_xm, k_p = jax.random.split(key, 5)

    y_mean = jax.random.normal(k_y, (T, B, latent_dim), jnp.float32)
    y_std = jnp.abs(jax.random.normal(k_s, (T, B, latent_dim), jnp.float32))
    x_data = jax.random.normal(k_xd, (T, B, n_data_dims), jnp.float32)
    x_mask = (jax.random.uniform(k_xm, (T, B, n_data_dims)) > 0.5).astype(jnp.float32)
    # zero the mask for some rows so the masked_update branch is exercised
    row_kill = (jnp.arange(B) % 3 == 0).astype(jnp.float32)[None, :, None]
    x_mask = x_mask * (1.0 - row_kill)
    x = jnp.concatenate([x_data, x_mask], axis=-1)

    nat = init_params(k_p, latent_dim, input_dim, n_units)
    kparams = pack_params(nat, latent_dim, input_dim, n_units)

    ref_y, ref_s = gru_unit_reference(y_mean, y_std, x, nat)

    # 1) f32 storage + f32 matmul operands.
    new_y, new_s = gru_unit_forward(y_mean, y_std, x, kparams)
    jax.block_until_ready((new_y, new_s))
    assert new_y.shape == (T, B, latent_dim) and new_s.shape == (T, B, latent_dim)
    assert jnp.allclose(new_y, ref_y, rtol=1e-4, atol=1e-4)
    assert jnp.allclose(new_s, ref_s, rtol=1e-4, atol=1e-4)
    assert not bool(jnp.isnan(new_y).any())

    # 2) bf16 matmul operands (MXU-friendly on v5e/v6e/v7x), f32 elementwise/accum.
    by, bs = gru_unit_forward(y_mean, y_std, x, kparams, compute_dtype=jnp.bfloat16)
    jax.block_until_ready((by, bs))
    assert jnp.allclose(by, ref_y, rtol=5e-2, atol=5e-2)
    assert jnp.allclose(bs, ref_s, rtol=5e-2, atol=5e-2)

    # 3) bf16 activation/state storage (production, HBM-bandwidth-bound regime):
    #    packed bf16 state kept end-to-end, 16-row sublane tiling.
    widen = lambda a: jnp.concatenate([a, a[:, :1]], axis=1)   # B: 7 -> 8 (M = 32)
    ym2, ys2, x2 = widen(y_mean), widen(y_std), widen(x)
    yp16 = jnp.concatenate([ym2, ys2], axis=-1).astype(jnp.bfloat16)
    x16 = x2.astype(jnp.bfloat16)
    out16 = gru_unit_forward_packed(yp16, x16, kparams, compute_dtype=jnp.bfloat16)
    jax.block_until_ready(out16)
    ref_y16, ref_s16 = gru_unit_reference(
        yp16[..., :latent_dim].astype(jnp.float32),
        yp16[..., latent_dim:].astype(jnp.float32),
        x16.astype(jnp.float32), nat)
    assert jnp.allclose(out16[..., :latent_dim].astype(jnp.float32), ref_y16,
                        rtol=5e-2, atol=5e-2)
    assert jnp.allclose(out16[..., latent_dim:].astype(jnp.float32), ref_s16,
                        rtol=5e-2, atol=5e-2)
    assert not bool(jnp.isnan(out16.astype(jnp.float32)).any())

    print("KERNEL_OK")
</pallas_src>

<mosaic_0001>
module attributes {stable_mosaic.version = 11 : i64} {
  func.func @gru_unit_kernel(%arg0: i32, %arg1: memref<24x128xf32, #tpu.memory_space<vmem>>, %arg2: memref<24x32xf32, #tpu.memory_space<vmem>>, %arg3: memref<160x192xf32, #tpu.memory_space<vmem>>, %arg4: memref<1x192xf32, #tpu.memory_space<vmem>>, %arg5: memref<128x128xf32, #tpu.memory_space<vmem>>, %arg6: memref<1x128xf32, #tpu.memory_space<vmem>>, %arg7: memref<128x64xf32, #tpu.memory_space<vmem>>, %arg8: memref<64x128xf32, #tpu.memory_space<vmem>>, %arg9: memref<1x128xf32, #tpu.memory_space<vmem>>, %arg10: memref<24x128xf32, #tpu.memory_space<vmem>>) attributes {dimension_semantics = [#tpu.dimension_semantics<parallel>], iteration_bounds = array<i64: 2>, scalar_prefetch = 0 : i64, scratch_operands = 0 : i64, tpu.core_type = #tpu.core_type<tc>, window_params = [{transform_indices = @transform_0, window_bounds = array<i64: 24, 128>}, {transform_indices = @transform_1, window_bounds = array<i64: 24, 32>}, {pipeline_mode = #tpu.pipeline_mode<synchronous>, transform_indices = @transform_2, window_bounds = array<i64: 160, 192>}, {pipeline_mode = #tpu.pipeline_mode<synchronous>, transform_indices = @transform_3, window_bounds = array<i64: 1, 192>}, {pipeline_mode = #tpu.pipeline_mode<synchronous>, transform_indices = @transform_4, window_bounds = array<i64: 128, 128>}, {pipeline_mode = #tpu.pipeline_mode<synchronous>, transform_indices = @transform_5, window_bounds = array<i64: 1, 128>}, {pipeline_mode = #tpu.pipeline_mode<synchronous>, transform_indices = @transform_6, window_bounds = array<i64: 128, 64>}, {pipeline_mode = #tpu.pipeline_mode<synchronous>, transform_indices = @transform_7, window_bounds = array<i64: 64, 128>}, {pipeline_mode = #tpu.pipeline_mode<synchronous>, transform_indices = @transform_8, window_bounds = array<i64: 1, 128>}, {transform_indices = @transform_9, window_bounds = array<i64: 24, 128>}]} {
    %c0 = arith.constant 0 : index
    %c0_0 = arith.constant 0 : index
    %0 = vector.load %arg1[%c0, %c0_0] : memref<24x128xf32, #tpu.memory_space<vmem>>, vector<24x128xf32>
    %c0_1 = arith.constant 0 : index
    %c0_2 = arith.constant 0 : index
    %1 = vector.load %arg2[%c0_1, %c0_2] : memref<24x32xf32, #tpu.memory_space<vmem>>, vector<24x32xf32>
    %c0_3 = arith.constant 0 : index
    %c0_4 = arith.constant 0 : index
    %2 = vector.load %arg3[%c0_3, %c0_4] : memref<160x192xf32, #tpu.memory_space<vmem>>, vector<128x192xf32>
    %cst = arith.constant dense<0.000000e+00> : vector<24x192xf32>
    %3 = tpu.matmul %0, %2, %cst {dimension_numbers = #tpu.dot_dimension_numbers<[1], [0], [0], [1], [0, 0, 1, 1], [], []>} : vector<24x128xf32>, vector<128x192xf32>, vector<24x192xf32> -> vector<24x192xf32>
    %c128 = arith.constant 128 : index
    %c0_5 = arith.constant 0 : index
    %4 = vector.load %arg3[%c128, %c0_5] : memref<160x192xf32, #tpu.memory_space<vmem>>, vector<32x192xf32>
    %cst_6 = arith.constant dense<0.000000e+00> : vector<24x192xf32>
    %5 = tpu.matmul %1, %4, %cst_6 {dimension_numbers = #tpu.dot_dimension_numbers<[1], [0], [0], [1], [0, 0, 1, 1], [], []>} : vector<24x32xf32>, vector<32x192xf32>, vector<24x192xf32> -> vector<24x192xf32>
    %6 = arith.addf %3, %5 : vector<24x192xf32>
    %c0_7 = arith.constant 0 : index
    %c0_8 = arith.constant 0 : index
    %7 = vector.load %arg4[%c0_7, %c0_8] : memref<1x192xf32, #tpu.memory_space<vmem>>, vector<1x192xf32>
    %8 = vector.broadcast %7 : vector<1x192xf32> to vector<24x192xf32>
    %9 = arith.addf %6, %8 : vector<24x192xf32>
    %10 = vector.extract_strided_slice %9 {offsets = [0, 0], sizes = [24, 128], strides = [1, 1]} : vector<24x192xf32> to vector<24x128xf32>
    %11 = math.tanh %10 : vector<24x128xf32>
    %12 = vector.extract_strided_slice %9 {offsets = [0, 128], sizes = [24, 64], strides = [1, 1]} : vector<24x192xf32> to vector<24x64xf32>
    %c0_9 = arith.constant 0 : index
    %c0_10 = arith.constant 0 : index
    %13 = vector.load %arg5[%c0_9, %c0_10] : memref<128x128xf32, #tpu.memory_space<vmem>>, vector<128x128xf32>
    %cst_11 = arith.constant dense<0.000000e+00> : vector<24x128xf32>
    %14 = tpu.matmul %11, %13, %cst_11 {dimension_numbers = #tpu.dot_dimension_numbers<[1], [0], [0], [1], [0, 0, 1, 1], [], []>} : vector<24x128xf32>, vector<128x128xf32>, vector<24x128xf32> -> vector<24x128xf32>
    %c0_12 = arith.constant 0 : index
    %c0_13 = arith.constant 0 : index
    %15 = vector.load %arg6[%c0_12, %c0_13] : memref<1x128xf32, #tpu.memory_space<vmem>>, vector<1x128xf32>
    %16 = vector.broadcast %15 : vector<1x128xf32> to vector<24x128xf32>
    %17 = arith.addf %14, %16 : vector<24x128xf32>
    %18 = arith.negf %17 : vector<24x128xf32>
    %19 = math.exp %18 : vector<24x128xf32>
    %cst_14 = arith.constant 1.000000e+00 : f32
    %20 = vector.broadcast %cst_14 : f32 to vector<24x128xf32>
    %21 = arith.addf %20, %19 : vector<24x128xf32>
    %22 = arith.divf %20, %21 : vector<24x128xf32>
    %23 = tpu.iota {dimensions = array<i32: 1>} : vector<24x128xi32>
    %c64_i32 = arith.constant 64 : i32
    %24 = vector.broadcast %c64_i32 : i32 to vector<24x128xi32>
    %25 = arith.cmpi slt, %23, %24 : vector<24x128xi32>
    %c64_i32_15 = arith.constant 64 : i32
    %26 = tpu.dynamic_rotate %22 by %c64_i32_15 dim 1 : vector<24x128xf32>, i32 -> vector<24x128xf32>
    %27 = arith.select %25, %26, %22 : vector<24x128xi1>, vector<24x128xf32>
    %28 = arith.select %25, %22, %26 : vector<24x128xi1>, vector<24x128xf32>
    %29 = arith.mulf %0, %27 : vector<24x128xf32>
    %c0_16 = arith.constant 0 : index
    %c0_17 = arith.constant 0 : index
    %30 = vector.load %arg7[%c0_16, %c0_17] : memref<128x64xf32, #tpu.memory_space<vmem>>, vector<128x64xf32>
    %cst_18 = arith.constant dense<0.000000e+00> : vector<24x64xf32>
    %31 = tpu.matmul %29, %30, %cst_18 {dimension_numbers = #tpu.dot_dimension_numbers<[1], [0], [0], [1], [0, 0, 1, 1], [], []>} : vector<24x128xf32>, vector<128x64xf32>, vector<24x64xf32> -> vector<24x64xf32>
    %32 = arith.addf %31, %12 : vector<24x64xf32>
    %33 = math.tanh %32 : vector<24x64xf32>
    %c0_19 = arith.constant 0 : index
    %c0_20 = arith.constant 0 : index
    %34 = vector.load %arg8[%c0_19, %c0_20] : memref<64x128xf32, #tpu.memory_space<vmem>>, vector<64x128xf32>
    %cst_21 = arith.constant dense<0.000000e+00> : vector<24x128xf32>
    %35 = tpu.matmul %33, %34, %cst_21 {dimension_numbers = #tpu.dot_dimension_numbers<[1], [0], [0], [1], [0, 0, 1, 1], [], []>} : vector<24x64xf32>, vector<64x128xf32>, vector<24x128xf32> -> vector<24x128xf32>
    %c0_22 = arith.constant 0 : index
    %c0_23 = arith.constant 0 : index
    %36 = vector.load %arg9[%c0_22, %c0_23] : memref<1x128xf32, #tpu.memory_space<vmem>>, vector<1x128xf32>
    %37 = vector.broadcast %36 : vector<1x128xf32> to vector<24x128xf32>
    %38 = arith.addf %35, %37 : vector<24x128xf32>
    %39 = math.absf %38 : vector<24x128xf32>
    %40 = arith.select %25, %38, %39 : vector<24x128xi1>, vector<24x128xf32>
    %cst_24 = arith.constant 1.000000e+00 : f32
    %41 = vector.broadcast %cst_24 : f32 to vector<24x128xf32>
    %42 = arith.subf %41, %28 : vector<24x128xf32>
    %43 = arith.mulf %42, %40 : vector<24x128xf32>
    %44 = arith.mulf %28, %0 : vector<24x128xf32>
    %45 = arith.addf %43, %44 : vector<24x128xf32>
    %46 = vector.extract_strided_slice %1 {offsets = [0, 16], sizes = [24, 16], strides = [1, 1]} : vector<24x32xf32> to vector<24x16xf32>
    %cst_25 = arith.constant dense<0.000000e+00> : vector<24xf32>
    %47 = vector.multi_reduction <add>, %46, %cst_25 [1] : vector<24x16xf32> to vector<24xf32>
    %48 = vector.shape_cast %47 : vector<24xf32> to vector<24x1xf32>
    %cst_26 = arith.constant 0.000000e+00 : f32
    %49 = vector.broadcast %cst_26 : f32 to vector<24x1xf32>
    %50 = arith.cmpf ogt, %48, %49 : vector<24x1xf32>
    %51 = arith.extui %50 : vector<24x1xi1> to vector<24x1xi32>
    %52 = arith.sitofp %51 : vector<24x1xi32> to vector<24x1xf32>
    %53 = vector.broadcast %52 : vector<24x1xf32> to vector<24x128xf32>
    %54 = arith.mulf %53, %45 : vector<24x128xf32>
    %cst_27 = arith.constant 1.000000e+00 : f32
    %55 = vector.broadcast %cst_27 : f32 to vector<24x1xf32>
    %56 = arith.subf %55, %52 : vector<24x1xf32>
    %57 = vector.broadcast %56 : vector<24x1xf32> to vector<24x128xf32>
    %58 = arith.mulf %57, %0 : vector<24x128xf32>
    %59 = arith.addf %54, %58 : vector<24x128xf32>
    %60 = math.absf %59 : vector<24x128xf32>
    %61 = arith.select %25, %59, %60 : vector<24x128xi1>, vector<24x128xf32>
    %c0_28 = arith.constant 0 : index
    %c0_29 = arith.constant 0 : index
    %62 = vector.load %arg10[%c0_28, %c0_29] : memref<24x128xf32, #tpu.memory_space<vmem>>, vector<24x128xf32>
    tpu.vector_store %arg10[%c0_28, %c0_29], %61 {strides = array<i32>} : memref<24x128xf32, #tpu.memory_space<vmem>>, vector<24x128xf32>,
    return
  }
  func.func @transform_0(%arg0: i32) -> (i32, i32) {
    %c0_i32 = arith.constant 0 : i32
    %c0_i32_0 = arith.constant 0 : i32
    return %arg0, %c0_i32 : i32, i32
  }
  func.func @transform_1(%arg0: i32) -> (i32, i32) {
    %c0_i32 = arith.constant 0 : i32
    %c0_i32_0 = arith.constant 0 : i32
    return %arg0, %c0_i32 : i32, i32
  }
  func.func @transform_2(%arg0: i32) -> (i32, i32) {
    %c0_i32 = arith.constant 0 : i32
    %c0_i32_0 = arith.constant 0 : i32
    %c0_i32_1 = arith.constant 0 : i32
    return %c0_i32, %c0_i32_0 : i32, i32
  }
  func.func @transform_3(%arg0: i32) -> (i32, i32) {
    %c0_i32 = arith.constant 0 : i32
    %c0_i32_0 = arith.constant 0 : i32
    %c0_i32_1 = arith.constant 0 : i32
    return %c0_i32, %c0_i32_0 : i32, i32
  }
  func.func @transform_4(%arg0: i32) -> (i32, i32) {
    %c0_i32 = arith.constant 0 : i32
    %c0_i32_0 = arith.constant 0 : i32
    %c0_i32_1 = arith.constant 0 : i32
    return %c0_i32, %c0_i32_0 : i32, i32
  }
  func.func @transform_5(%arg0: i32) -> (i32, i32) {
    %c0_i32 = arith.constant 0 : i32
    %c0_i32_0 = arith.constant 0 : i32
    %c0_i32_1 = arith.constant 0 : i32
    return %c0_i32, %c0_i32_0 : i32, i32
  }
  func.func @transform_6(%arg0: i32) -> (i32, i32) {
    %c0_i32 = arith.constant 0 : i32
    %c0_i32_0 = arith.constant 0 : i32
    %c0_i32_1 = arith.constant 0 : i32
    return %c0_i32, %c0_i32_0 : i32, i32
  }
  func.func @transform_7(%arg0: i32) -> (i32, i32) {
    %c0_i32 = arith.constant 0 : i32
    %c0_i32_0 = arith.constant 0 : i32
    %c0_i32_1 = arith.constant 0 : i32
    return %c0_i32, %c0_i32_0 : i32, i32
  }
  func.func @transform_8(%arg0: i32) -> (i32, i32) {
    %c0_i32 = arith.constant 0 : i32
    %c0_i32_0 = arith.constant 0 : i32
    %c0_i32_1 = arith.constant 0 : i32
    return %c0_i32, %c0_i32_0 : i32, i32
  }
  func.func @transform_9(%arg0: i32) -> (i32, i32) {
    %c0_i32 = arith.constant 0 : i32
    %c0_i32_0 = arith.constant 0 : i32
    return %arg0, %c0_i32 : i32, i32
  }
}

</mosaic_0001>

<bundles_post_ra>
// kernel: gru_unit_forward_packed.1
= control target key start
LH: loop header
LB: loop body
LE: loop exit
PB: predicated region body
PF: predicated region fallthrough
CT: control target
= control target key end

     0   :  { %14 = vsyncpa [#allocation3], 0  ;;  %s1924_s30 = smov 0   ;;  %s1926_s10 = smov 0   ;;  %s2423_s0 = inlined_call_operand.vmem [shape: f32[28,128], index: 0, kind: input, shape index: {}]   ;;  %s2424_s1 = inlined_call_operand.vmem [shape: f32[28,32], index: 1, kind: input, shape index: {}]   ;;  %s2425_s2 = inlined_call_operand.vmem [shape: f32[160,192], index: 2, kind: input, shape index: {}]   ;;  %s2426_s3 = inlined_call_operand.vmem [shape: f32[1,192], index: 3, kind: input, shape index: {}]   ;;  %s2427_s4 = inlined_call_operand.vmem [shape: f32[128,128], index: 4, kind: input, shape index: {}]   ;;  %s2428_s5 = inlined_call_operand.vmem [shape: f32[1,128], index: 5, kind: input, shape index: {}]   ;;  %s2429_s6 = inlined_call_operand.vmem [shape: f32[128,64], index: 6, kind: input, shape index: {}]   ;;  %s2430_s7 = inlined_call_operand.hbm [shape: f32[64,128], index: 7, kind: input, shape index: {}]   ;;  %s2431_s8 = inlined_call_operand.vmem [shape: f32[1,128], index: 8, kind: input, shape index: {}]   ;;  %s2432_s9 = inlined_call_operand.vmem [shape: f32[28,128], index: 9, kind: output, shape index: {}]  }
   0x1   :  { %s1928_s11 = smov 0  }
   0x2 LB: > { %s1937_s12 = sadd.s32 4294967295, %s1832_s11   ;;  %s1939_s13 = sadd.s32 1, %s1832_s11   ;;  %s1832_s11 = sphi %s1928_s11, %s2444_s11   ;;  %s1828_s10 = sphi %s1926_s10, %s2443_s10   ;;  %s1824_s30 = sphi %s1924_s30, %s2442_s30  }
   0x3   : > { %s223_s14 = ssub.s32 %s1832_s11, %s1939_s13  ;;  %s226_s15 = sadd.s32 1, %s1828_s10 }
   0x4   : > { %p224_p0 = scmp.eq.s32.totalorder %s223_s14, 0  ;;  %p236_p1 = scmp.ne.s32.totalorder %s1828_s10, %s1824_s30 }
   0x5   : > { %p237_p2 = scmp.eq.s32.totalorder %s1937_s12, 1  ;;  %p1314_p3 = scmp.ge.s32.totalorder %s1832_s11, 1 }
   0x6   : > { %s1947_s16 = scalar_select %p224_p0, %s1828_s10, %s226_s15  }
   0x7   : > { %p1949_p4 = por %p237_p2, %p236_p1  ;;  %p250_p5 = scmp.lt.s32.totalorder %s1832_s11, 3 }
   0x8   : > { %p2433_p6 = scmp.eq.s32.totalorder %s1937_s12, 0  ;;  %s1866_s19 = smov [#allocation2]  }
   0x9   : > { %s2435_s17 = scalar_select %p1949_p4, 1, 0 }
   0xa   : > { %p1954_p7 = pnand %p1314_p3, %p250_p5  ;;  %s277_s20 = sshll.u32 %s1866_s19, 4  ;;  %s278_s20 = int_to_ptr.vmem [resolvable:$true] %s277_s20 }
   0xb   : > { %s1746_s24 = scalar_lea.hbm %s2430_s7, 1024 }
   0xc   : > { %s2436_s18 = scalar_select %p1954_p7, 1, 0 }
   0xd   : > { %p1615_p8 = pneg %p1954_p7  ;;  %p1747_p10 = scmp.ne.s32.totalorder %s2430_s7, %s1746_s24 }
   0xe   : > { %p1753_p0 = scmp.lt.u32.totalorder %s1746_s24, %s2430_s7 }
   0xf   : > { %p1962_p9 = pnand %p2433_p6, %p1615_p8 }
  0x11   : > { %p1748_p11 = pneg %p1962_p9 }
  0x13   : > { %p1749_p12 = pnand %p1748_p11, %p1747_p10 }
  0x15   : > { %p1750_p13 = pneg %p1749_p12 }
  0x17   : > { %p1755_p1 = pnand %p1753_p0, %p1750_p13 }
  0x19   : > { %1758 = shalt.err (!%p1755_p1)
}
  0x1a   : > { %s1759_s29 = scalar_lea.vmem %s278_s20, 1024  ;;  %p1767_p8 = scmp.lt.s32.totalorder %s278_s20, %s278_s20 }
  0x1b   : > { %p1760_p2 = scmp.ne.s32.totalorder %s278_s20, %s1759_s29  ;;  %p1768_p6 = scmp.lt.s32.totalorder %s1759_s29, %s1759_s29 }
  0x1d   : > { %p1762_p3 = pnand %p1760_p2, %p1748_p11  ;;  %p1769_p4 = por %p1768_p6, %p1767_p8 }
  0x1f   : > { %p1763_p5 = pneg %p1762_p3 }
  0x21   : > { %p1770_p7 = pnand %p1769_p4, %p1763_p5 }
  0x23   : > { %1773 = shalt.err (!%p1770_p7)
}
  0x24   : > { %s1867_s11 = smov 128   ;;  %s1868_s14 = smov 8  }
  0x25   : > { %1618 = dma.hbm_to_vmem [thread:$0]  (!%p1962_p9), %s2430_s7, 1024, %s278_s20, [#allocation3], %s1867_s11, %s1867_s11, %s1868_s14  }
  0x26   : > { %p2438_p10 = scmp.ne.s32.totalorder %s2436_s18, 0 }
  0x27   : > { %p2439_p12 = scmp.eq.s32.totalorder (!%p2438_p10), %s1937_s12, 0 }
  0x28   : > { %330 = sbr.rel (%p2438_p10) target bundleno = 1197 (0x4ad), region = 56 }
  0x2f   : > { %1819 = dma.done.wait (%p2439_p12), [#allocation3], 1024   ;;  %p2440_p11 = pmov %p2439_p12 }
  0x30   : > { %s1989_s22 = smul.u32 3, %s1937_s12  ;;  %v1869_v0 = vmov 0.0   ;;  %v1870_v1 = vmov 0.0|0.0   ;;  %v450_v2 = vld [vmem:[%s2425_s2 + $0x108] sm:$0xff]  ;;  %v452_v3 = vld [vmem:[%s2425_s2 + $0x118] sm:$0xff]  ;;  %v449_v4 = vld [vmem:[%s2425_s2 + $0x100] sm:$0xff] }
  0x31   : > { %1821 = vsyncadd (%p2440_p11), [#allocation3], 4294966272  ;;  %531 = vmatprep.mubr.f32.mxu0 %v1869_v0  ;;  %1544 = vmatprep.subr.bf16.mxu1 %v1870_v1  ;;  %v1504_v5 = vpack.c.bf16 %v452_v3, %v450_v2  ;;  %v451_v6 = vld [vmem:[%s2425_s2 + $0x110] sm:$0xff]  ;;  %v454_v7 = vld [vmem:[%s2425_s2 + $0x128] sm:$0xff]  ;;  %vm457_vm0 = vcmask 261120   ;;  %vm1871_vm1 = vmmov 0  }
  0x32   : > { %p383_p4 = scmp.lt.s32.totalorder %s1989_s22, 3  ;;  %v456_v8 = vld [vmem:[%s2425_s2 + $0x138] sm:$0xff]  ;;  %v1506_v9 = vpack.c.bf16 %v451_v6, %v449_v4  ;;  %v453_v11 = vld [vmem:[%s2425_s2 + $0x120] sm:$0xff]  ;;  %v455_v12 = vld [vmem:[%s2425_s2 + $0x130] sm:$0xff]  ;;  %1429 = vmatprep.mubr.msk.f32.mxu1 %vm1871_vm1, %v1869_v0  ;;  %s1872_s24 = smov 64   ;;  %vm1024_vm3 = vcmask 130048  }
  0x33   : > { %v1508_v10 = vpack.c.bf16 %v456_v8, %v454_v7  ;;  %v418_v13 = vld [vmem:[%s2425_s2 + $0x8] sm:$0xff]  ;;  %1505 = vmatprep.subr.bf16.mxu0 %v1504_v5  ;;  %v420_v14 = vld [vmem:[%s2425_s2 + $0x18] sm:$0xff]  ;;  %v1510_v15 = vpack.c.bf16 %v455_v12, %v453_v11  ;;  %v417_v17 = vld [vmem:[%s2425_s2] sm:$0xff]  ;;  %s1873_s25 = smov 112   ;;  %vm907_vm4 = vcmask 523264   ;;  %s375_s29 = sand.u32 1, %s1824_s30  }
  0x34   : > { %s1995_s18 = scalar_select %p383_p4, %s1989_s22, 3  ;;  %1507 = vmatpush1.bf16.msra.mxu0 %v1506_v9  ;;  %v1512_v16 = vpack.c.bf16 %v420_v14, %v418_v13  ;;  %v419_v18 = vld [vmem:[%s2425_s2 + $0x10] sm:$0xff]  ;;  %v422_v19 = vld [vmem:[%s2425_s2 + $0x28] sm:$0xff]  ;;  %v424_v20 = vld [vmem:[%s2425_s2 + $0x38] sm:$0xff] }
  0x35   : > { %1509 = vmatprep.subr.bf16.mxu0 %v1508_v10  ;;  %v1514_v22 = vpack.c.bf16 %v419_v18, %v417_v17  ;;  %v1516_v23 = vpack.c.bf16 %v424_v20, %v422_v19  ;;  %v421_v24 = vld [vmem:[%s2425_s2 + $0x20] sm:$0xff]  ;;  %v423_v25 = vld [vmem:[%s2425_s2 + $0x30] sm:$0xff]  ;;  %v426_v26 = vld [vmem:[%s2425_s2 + $0x48] sm:$0xff]  ;;  %s1610_s30 = smul.u32 24, %s375_s29  ;;  %p2441_p6 = scmp.ne.s32.totalorder %s2435_s17, 0 }
  0x36   : > { %s1319_s26 = sshll.u32 %s1995_s18, 3  ;;  %v428_v27 = vld [vmem:[%s2425_s2 + $0x58] sm:$0xff]  ;;  %v1518_v28 = vpack.c.bf16 %v423_v25, %v421_v24  ;;  %v425_v31 = vld [vmem:[%s2425_s2 + $0x40] sm:$0xff]  ;;  %v427_v32 = vld [vmem:[%s2425_s2 + $0x50] sm:$0xff]  ;;  %s1072_s15 = ssub.s32 (%p2441_p6), 4, %s1989_s22 }
  0x37   : > { %s2033_s14 = scalar_lea.vmem %s2424_s1, %s1319_s26  ;;  %v1520_v30 = vpack.c.bf16 %v428_v27, %v426_v26  ;;  %v430_v33 = vld [vmem:[%s2425_s2 + $0x68] sm:$0xff]  ;;  %v432_v34 = vld [vmem:[%s2425_s2 + $0x78] sm:$0xff]  ;;  %v654_v35 = vld [vmem:[%s2427_s4] sm:$0xff]  ;;  %v1522_v37 = vpack.c.bf16 %v427_v32, %v425_v31  ;;  %s386_s19 = scalar_lea.vmem %s2423_s0, %s1319_s26 }
  0x38   : > { %1511 = vmatpush1.bf16.msra.mxu0 %v1510_v15  ;;  %v2048_v21 = vld [vmem:[%s2033_s14] sm:$0xff]  ;;  %v2066_v29 = vld [vmem:[%s2033_s14 + $0x8] sm:$0xff]  ;;  %v2090_v38 = vld [vmem:[%s2033_s14 + $0x10] sm:$0xff]  ;;  %v1524_v42 = vpack.c.bf16 %v432_v34, %v430_v33  ;;  %s2378_s11 = scalar_lea.vmem [#allocation4], %s1610_s30   ;;  %p1073_p7 = scmp.lt.s32.totalorder (%p2441_p6), %s1072_s15, 3 }
  0x39   : > { %1513 = vmatprep.subr.bf16.mxu0 %v1512_v16  ;;  %v655_v36 = vld [vmem:[%s2427_s4 + $0x8] sm:$0xff]  ;;  %v656_v40 = vld [vmem:[%s2427_s4 + $0x10] sm:$0xff]  ;;  %v657_v41 = vld [vmem:[%s2427_s4 + $0x18] sm:$0xff] }
  0x3a   : > { %v1545_v39 = vpack.c.bf16 %v655_v36, %v654_v35  ;;  %v429_v43 = vld [vmem:[%s2425_s2 + $0x60] sm:$0xff]  ;;  %v431_v44 = vld [vmem:[%s2425_s2 + $0x70] sm:$0xff]  ;;  %v434_v45 = vld [vmem:[%s2425_s2 + $0x88] sm:$0xff]  ;;  %v1548_v47 = vpack.c.bf16 %v657_v41, %v656_v40 }
  0x3b   : > { %1321 = vmatmul.mubr.msk.f32.vlgmr.msra.gmra.mrb[0].mxu0 %vm457_vm0, %v2048_v21  ;;  %v436_v46 = vld [vmem:[%s2425_s2 + $0x98] sm:$0xff]  ;;  %v658_v48 = vld [vmem:[%s2427_s4 + $0x20] sm:$0xff]  ;;  %v659_v49 = vld [vmem:[%s2427_s4 + $0x28] sm:$0xff]  ;;  %v1526_v50 = vpack.c.bf16 %v431_v44, %v429_v43 }
  0x3c   : > { %1515 = vmatpush1.bf16.msra.mxu0 %v1514_v22  ;;  %537 = vmatprep.mubr.f32.mxu0 %v1869_v0  ;;  %v1528_v51 = vpack.c.bf16 %v436_v46, %v434_v45  ;;  %v433_v52 = vld [vmem:[%s2425_s2 + $0x80] sm:$0xff]  ;;  %v435_v53 = vld [vmem:[%s2425_s2 + $0x90] sm:$0xff]  ;;  %v438_v54 = vld [vmem:[%s2425_s2 + $0xa8] sm:$0xff]  ;;  %v1551_v56 = vpack.c.bf16 %v659_v49, %v658_v48  ;;  %v635_v22 = vlaneseq }
  0x3d   : > { %1517 = vmatprep.subr.bf16.mxu0 %v1516_v23  ;;  %1546 = vmatpush3.bf16.msra.mxu1 %v1545_v39  ;;  %v440_v55 = vld [vmem:[%s2425_s2 + $0xb8] sm:$0xff]  ;;  %v660_v57 = vld [vmem:[%s2427_s4 + $0x30] sm:$0xff]  ;;  %v1530_v59 = vpack.c.bf16 %v435_v53, %v433_v52  ;;  %v437_v61 = vld [vmem:[%s2425_s2 + $0xa0] sm:$0xff] }
  0x3e   : > { %1547 = vmatprep.subr.bf16.mxu1 %v1870_v1  ;;  %v661_v58 = vld [vmem:[%s2427_s4 + $0x38] sm:$0xff]  ;;  %v1532_v60 = vpack.c.bf16 %v440_v55, %v438_v54  ;;  %v439_v62 = vld [vmem:[%s2425_s2 + $0xb0] sm:$0xff]  ;;  %v442_v63 = vld [vmem:[%s2425_s2 + $0xc8] sm:$0xff]  ;;  %v636_v23 = vshrl.u32 %v635_v22, 7 }
  0x3f   : > { %1322 = vmatmul.mubr.msk.f32.gmra.mrb[2].mxu0 %vm457_vm0, %v2066_v29  ;;  %v444_v2 = vld [vmem:[%s2425_s2 + $0xd8] sm:$0xff]  ;;  %v1554_v3 = vpack.c.bf16 %v661_v58, %v660_v57  ;;  %v662_v4 = vld [vmem:[%s2427_s4 + $0x40] sm:$0xff]  ;;  %v663_v5 = vld [vmem:[%s2427_s4 + $0x48] sm:$0xff]  ;;  %v1534_v6 = vpack.c.bf16 %v439_v62, %v437_v61 }
  0x40   : > { %1519 = vmatpush1.bf16.msra.mxu0 %v1518_v28  ;;  %543 = vmatprep.mubr.f32.mxu0 %v1869_v0  ;;  %v1536_v7 = vpack.c.bf16 %v444_v2, %v442_v63  ;;  %v441_v8 = vld [vmem:[%s2425_s2 + $0xc0] sm:$0xff]  ;;  %v443_v9 = vld [vmem:[%s2425_s2 + $0xd0] sm:$0xff]  ;;  %v446_v10 = vld [vmem:[%s2425_s2 + $0xe8] sm:$0xff]  ;;  %v1557_v12 = vpack.c.bf16 %v663_v5, %v662_v4  ;;  %v641_v25 = vsub.s32 1, %v636_v23 }
  0x41   : > { %1521 = vmatprep.subr.bf16.mxu0 %v1520_v30  ;;  %1549 = vmatpush3.bf16.msra.mxu1 %v1548_v47  ;;  %v448_v11 = vld [vmem:[%s2425_s2 + $0xf8] sm:$0xff]  ;;  %v1538_v13 = vpack.c.bf16 %v443_v9, %v441_v8  ;;  %v445_v15 = vld [vmem:[%s2425_s2 + $0xe0] sm:$0xff]  ;;  %v447_v16 = vld [vmem:[%s2425_s2 + $0xf0] sm:$0xff] }
  0x42   : > { %1550 = vmatprep.subr.bf16.mxu1 %v1870_v1  ;;  %v1540_v14 = vpack.c.bf16 %v448_v11, %v446_v10  ;;  %v1542_v17 = vpack.c.bf16 %v447_v16, %v445_v15  ;;  %v2183_v18 = vld [vmem:[%s386_s19] sm:$0xff]  ;;  %v2188_v19 = vld [vmem:[%s386_s19 + $0x8] sm:$0xff]  ;;  %v2192_v20 = vld [vmem:[%s386_s19 + $0x10] sm:$0xff]  ;;  %s1347_s19 = smul.u32 (%p2441_p6), 24, %s1937_s12 }
  0x43   : > { %1323 = vmatmul.mubr.msk.f32.gmra.mrb[4].mxu0 %vm457_vm0, %v2090_v38  ;;  %v633_v24 = vld [vmem:[%s2426_s3] sm:$0x3]  ;;  %v664_v27 = vld [vmem:[%s2427_s4 + $0x50] sm:$0xff]  ;;  %v665_v28 = vld [vmem:[%s2427_s4 + $0x58] sm:$0xff] }
  0x44   : > { %1523 = vmatpush1.bf16.msra.mxu0 %v1522_v37  ;;  %614 = vmatprep.mubr.f32.mxu0 %v1869_v0  ;;  %v642_v26 = vrot.slane %v633_v24, %v641_v25  ;;  %v1560_v30 = vpack.c.bf16 %v665_v28, %v664_v27  ;;  %v666_v31 = vld [vmem:[%s2427_s4 + $0x60] sm:$0xff]  ;;  %v667_v32 = vld [vmem:[%s2427_s4 + $0x68] sm:$0xff]  ;;  %v668_v34 = vld [vmem:[%s2427_s4 + $0x70] sm:$0xff]  ;;  %v637_v37 = vsub.s32 0, %v636_v23  ;;  %s2394_s20 = scalar_lea.vmem (%p2441_p6), %s2432_s9, %s1347_s19  }
  0x45   : > { %1525 = vmatprep.subr.bf16.mxu0 %v1524_v42  ;;  %1552 = vmatpush3.bf16.msra.mxu1 %v1551_v56  ;;  %v1563_v33 = vpack.c.bf16 %v667_v32, %v666_v31  ;;  %v669_v35 = vld [vmem:[%s2427_s4 + $0x78] sm:$0xff]  ;;  %v793_v55 = vld [vmem:[%s2429_s6] sm:$0xff]  ;;  %v794_v56 = vld [vmem:[%s2429_s6 + $0x8] sm:$0xff] }
  0x46   : > { %1553 = vmatprep.subr.bf16.mxu1 %v1870_v1  ;;  %v1566_v36 = vpack.c.bf16 %v669_v35, %v668_v34  ;;  %v638_v39 = vrot.slane %v633_v24, %v637_v37  ;;  %v795_v57 = vld [vmem:[%s2429_s6 + $0x10] sm:$0xff]  ;;  %v1569_v58 = vpack.c.bf16 %v794_v56, %v793_v55  ;;  %v797_v61 = vld [vmem:[%s2429_s6 + $0x20] sm:$0xff]  ;;  %v798_v62 = vld [vmem:[%s2429_s6 + $0x28] sm:$0xff] }
  0x47   : > { %v1575_v63 = vpack.c.bf16 %v798_v62, %v797_v61  ;;  %v799_v2 = vld [vmem:[%s2429_s6 + $0x30] sm:$0xff]  ;;  %v801_v5 = vld [vmem:[%s2429_s6 + $0x40] sm:$0xff]  ;;  %v804_v9 = vld [vmem:[%s2429_s6 + $0x58] sm:$0xff] }
  0x48   : > { %1527 = vmatpush1.bf16.msra.mxu0 %v1526_v50  ;;  %v803_v8 = vld [vmem:[%s2429_s6 + $0x50] sm:$0xff]  ;;  %v805_v11 = vld [vmem:[%s2429_s6 + $0x60] sm:$0xff]  ;;  %v808_v34 = vld [vmem:[%s2429_s6 + $0x78] sm:$0xff] }
  0x49   : > { %1529 = vmatprep.subr.bf16.mxu0 %v1528_v51  ;;  %1555 = vmatpush3.bf16.msra.mxu1 %v1554_v3  ;;  %v800_v3 = vld [vmem:[%s2429_s6 + $0x38] sm:$0xff]  ;;  %v1584_v10 = vpack.c.bf16 %v804_v9, %v803_v8  ;;  %v896_v61 = vld [vmem:[#allocation2 + $0x20] sm:$0xff]  ;;  %v897_v62 = vld [vmem:[#allocation2 + $0x28] sm:$0xff] }
  0x4a   : > { %1556 = vmatprep.subr.bf16.mxu1 %v1870_v1  ;;  %v1578_v4 = vpack.c.bf16 %v800_v3, %v799_v2  ;;  %v898_v2 = vld [vmem:[#allocation2 + $0x30] sm:$0xff]  ;;  %v899_v3 = vld [vmem:[#allocation2 + $0x38] sm:$0xff] }
  0x4c   : > { %1531 = vmatpush1.bf16.msra.mxu0 %v1530_v59  ;;  %v796_v59 = vld [vmem:[%s2429_s6 + $0x18] sm:$0xff] }
  0x4d   : > { %1533 = vmatprep.subr.bf16.mxu0 %v1532_v60  ;;  %1558 = vmatpush3.bf16.msra.mxu1 %v1557_v12  ;;  %v1572_v60 = vpack.c.bf16 %v796_v59, %v795_v57  ;;  %v806_v12 = vld [vmem:[%s2429_s6 + $0x68] sm:$0xff]  ;;  %v895_v59 = vld [vmem:[#allocation2 + $0x18] sm:$0xff] }
  0x4e   : > { %1559 = vmatprep.subr.bf16.mxu1 %v1870_v1 }
  0x50   : > { %1535 = vmatpush1.bf16.msra.mxu0 %v1534_v6  ;;  %v802_v6 = vld [vmem:[%s2429_s6 + $0x48] sm:$0xff] }
  0x51   : > { %1537 = vmatprep.subr.bf16.mxu0 %v1536_v7  ;;  %1561 = vmatpush3.bf16.msra.mxu1 %v1560_v30  ;;  %v1581_v7 = vpack.c.bf16 %v802_v6, %v801_v5 }
  0x52   : > { %1562 = vmatprep.subr.bf16.mxu1 %v1870_v1 }
  0x54   : > { %1539 = vmatpush1.bf16.msra.mxu0 %v1538_v13  ;;  %v1587_v13 = vpack.c.bf16 %v806_v12, %v805_v11 }
  0x55   : > { %1541 = vmatprep.subr.bf16.mxu0 %v1540_v14  ;;  %1564 = vmatpush3.bf16.msra.mxu1 %v1563_v33  ;;  %v1324_v14 = vld [vmem:[%s2428_s5] ss:$0 sm:$0xff]  ;;  %v807_v33 = vld [vmem:[%s2429_s6 + $0x70] sm:$0xff] }
  0x56   : > { %1565 = vmatprep.subr.bf16.mxu1 %v1870_v1  ;;  %v1590_v35 = vpack.c.bf16 %v808_v34, %v807_v33 }
  0x58   : > { %1543 = vmatpush1.bf16.msra.mxu0 %v1542_v17 }
  0x59   : > { %1592 = vmatprep.subr.bf16.mxu0 %v1870_v1  ;;  %1567 = vmatpush3.bf16.msra.mxu1 %v1566_v36 }
  0x5a   : > { %1568 = vmatprep.subr.bf16.mxu1 %v1870_v1 }
  0x5b   : > { %615 = vmatmul.mubr.f32.vlgmr.msra.gmra.mrb[0].mxu0 %v2183_v18 }
  0x5c   : > { %620 = vmatprep.mubr.f32.mxu0 %v1869_v0 }
  0x5f   : > { %621 = vmatmul.mubr.f32.gmra.mrb[2].mxu0 %v2188_v19 }
  0x60   : > { %626 = vmatprep.mubr.f32.mxu0 %v1869_v0 }
  0x63   : > { %627 = vmatmul.mubr.f32.gmra.mrb[4].mxu0 %v2192_v20 }
  0x64   : > { %1495 = vmatprep.mubr.msk.f32.mxu0 %vm1871_vm1, %v1869_v0 }
 0x12e   : > { %v616_v40 = vpop.f32.mrb[0].mxu0 }
 0x12f   : > { %v645_v41 = vadd.f32 %v638_v39, %v616_v40  ;;  %v618_v42 = vpop.f32.mrb[1].mxu0 }
 0x130   : > { %v2224_v43 = vadd.f32 %v642_v26, %v618_v42 }
 0x131   : > { %1718 = vtanh.f32 %v645_v41 }
 0x132   : > { %v622_v44 = vpop.f32.mrb[2].mxu0 }
 0x133   : > { %v647_v45 = vadd.f32 %v638_v39, %v622_v44  ;;  %v624_v46 = vpop.f32.mrb[3].mxu0  ;;  %v892_v44 = vld [vmem:[#allocation2] sm:$0xff] }
 0x134   : > { %v2226_v47 = vadd.f32 %v642_v26, %v624_v46 }
 0x135   : > { %1720 = vtanh.f32 %v647_v45  ;;  %v893_v45 = vld [vmem:[#allocation2 + $0x8] sm:$0xff] }
 0x136   : > { %v628_v48 = vpop.f32.mrb[4].mxu0 }
 0x137   : > { %v649_v49 = vadd.f32 %v638_v39, %v628_v48  ;;  %v630_v50 = vpop.f32.mrb[5].mxu0  ;;  %v1593_v48 = vpack.c.bf16 %v893_v45, %v892_v44 }
 0x138   : > { %v2228_v51 = vadd.f32 %v642_v26, %v630_v50 }
 0x139   : > { %1722 = vtanh.f32 %v649_v49  ;;  %1594 = vmatpush3.bf16.msra.mxu0 %v1593_v48 }
 0x13a   : > { %1595 = vmatprep.subr.bf16.mxu0 %v1870_v1 }
 0x13b   : > { %v1719_v52 = vpop.eup %1718 }
 0x13c   : > { %1430 = vmatmul.mubr.f32.vlgmr.msra.gmra.mrb[0].mxu1 %v1719_v52  ;;  %v2308_v52 = vand.u32 127, %v635_v22 }
 0x13d   : > { %1432 = vmatprep.mubr.msk.f32.mxu1 %vm1871_vm1, %v1869_v0  ;;  %1570 = vmatpush3.bf16.msra.mxu1 %v1569_v58  ;;  %v894_v58 = vld [vmem:[#allocation2 + $0x10] sm:$0xff] }
 0x13e   : > { %1571 = vmatprep.subr.bf16.mxu1 %v1870_v1  ;;  %vm777_vm2 = vcmp.lt.s32.totalorder %v2308_v52, 64 }
 0x13f   : > { %v1721_v53 = vpop.eup %1720 }
 0x140   : > { %1433 = vmatmul.mubr.f32.gmra.mrb[2].mxu1 %v1721_v53 }
 0x141   : > { %1435 = vmatprep.mubr.msk.f32.mxu1 %vm1871_vm1, %v1869_v0  ;;  %1573 = vmatpush3.bf16.msra.mxu1 %v1572_v60  ;;  %v1596_v60 = vpack.c.bf16 %v895_v59, %v894_v58 }
 0x142   : > { %1574 = vmatprep.subr.bf16.mxu1 %v1870_v1 }
 0x143   : > { %v1723_v54 = vpop.eup %1722  ;;  %1597 = vmatpush3.bf16.msra.mxu0 %v1596_v60 }
 0x144   : > { %1436 = vmatmul.mubr.f32.gmra.mrb[4].mxu1 %v1723_v54  ;;  %1598 = vmatprep.subr.bf16.mxu0 %v1870_v1 }
 0x145   : > { %1470 = vmatprep.mubr.msk.f32.mxu1 %vm1871_vm1, %v1869_v0  ;;  %1576 = vmatpush3.bf16.msra.mxu1 %v1575_v63  ;;  %v1599_v63 = vpack.c.bf16 %v897_v62, %v896_v61 }
 0x146   : > { %1577 = vmatprep.subr.bf16.mxu1 %v1870_v1 }
 0x147   : > { %1600 = vmatpush3.bf16.msra.mxu0 %v1599_v63 }
 0x148   : > { %1601 = vmatprep.subr.bf16.mxu0 %v1870_v1 }
 0x149   : > { %1579 = vmatpush3.bf16.msra.mxu1 %v1578_v4  ;;  %v1602_v4 = vpack.c.bf16 %v899_v3, %v898_v2 }
 0x14a   : > { %1580 = vmatprep.subr.bf16.mxu1 %v1870_v1 }
 0x14b   : > { %1603 = vmatpush3.bf16.msra.mxu0 %v1602_v4 }
 0x14d   : > { %1582 = vmatpush3.bf16.msra.mxu1 %v1581_v7 }
 0x14e   : > { %1583 = vmatprep.subr.bf16.mxu1 %v1870_v1 }
 0x151   : > { %1585 = vmatpush3.bf16.msra.mxu1 %v1584_v10 }
 0x152   : > { %1586 = vmatprep.subr.bf16.mxu1 %v1870_v1 }
 0x155   : > { %1588 = vmatpush3.bf16.msra.mxu1 %v1587_v13 }
 0x156   : > { %1589 = vmatprep.subr.bf16.mxu1 %v1870_v1 }
 0x159   : > { %1591 = vmatpush3.bf16.msra.mxu1 %v1590_v35 }
 0x20f   : > { %v743_v15 = vpop.f32.mrb[0].mxu1 }
 0x210   : > { %v744_v16 = vadd.f32 %v1324_v14, %v743_v15  ;;  %v1431_v17 = vpop.f32.mrb[1].mxu1 }
 0x212   : > { %v1325_v23 = vmul.f32 -1.442695, %v744_v16 }
 0x213   : > { %v748_v24 = vpop.f32.mrb[2].mxu1 }
 0x214   : > { %1724 = vpow2.f32 %v1325_v23  ;;  %v749_v25 = vadd.f32 %v1324_v14, %v748_v24  ;;  %v1434_v26 = vpop.f32.mrb[3].mxu1 }
 0x216   : > { %v1326_v27 = vmul.f32 -1.442695, %v749_v25 }
 0x217   : > { %v753_v28 = vpop.f32.mrb[4].mxu1 }
 0x218   : > { %1726 = vpow2.f32 %v1326_v27  ;;  %v754_v30 = vadd.f32 %v1324_v14, %v753_v28  ;;  %v1437_v31 = vpop.f32.mrb[5].mxu1 }
 0x21a   : > { %v1327_v32 = vmul.f32 -1.442695, %v754_v30 }
 0x21c   : > { %1728 = vpow2.f32 %v1327_v32 }
 0x21e   : > { %v1725_v36 = vpop.eup %1724 }
 0x21f   : > { %v766_v37 = vadd.f32 1.0, %v1725_v36 }
 0x221   : > { %1730 = vrcp.f32 %v766_v37 }
 0x222   : > { %v1727_v39 = vpop.eup %1726 }
 0x223   : > { %v767_v40 = vadd.f32 1.0, %v1727_v39 }
 0x225   : > { %1732 = vrcp.f32 %v767_v40 }
 0x226   : > { %v1729_v41 = vpop.eup %1728 }
 0x227   : > { %v768_v42 = vadd.f32 1.0, %v1729_v41 }
 0x229   : > { %1734 = vrcp.f32 %v768_v42 }
 0x22b   : > { %v2294_v46 = vpop.eup %1730 }
 0x22c   : > { %778 = vrot.lane.b32.xlu0 %v2294_v46, %s1872_s24 }
 0x22f   : > { %v2298_v49 = vpop.eup %1732 }
 0x230   : > { %780 = vrot.lane.b32.xlu0 %v2298_v49, %s1872_s24 }
 0x233   : > { %v2301_v50 = vpop.eup %1734 }
 0x234   : > { %782 = vrot.lane.b32.xlu1 %v2301_v50, %s1872_s24  ;;  %1017 = vrot.lane.b32.xlu0 %v2066_v29, %s1873_s25 }
 0x238   : > { %1015 = vrot.lane.b32.xlu1 %v2048_v21, %s1873_s25 }
 0x23c   : > { %1019 = vrot.lane.b32.xlu1 %v2090_v38, %s1873_s25 }
 0x29e   : > { %v2311_v53 = vpop.permute.xlu0 %778 }
 0x29f   : > { %v784_v54 = vsel %vm777_vm2, %v2311_v53, %v2294_v46  ;;  %v787_v28 = vsel %vm777_vm2, %v2294_v46, %v2311_v53 }
 0x2a0   : > { %v790_v55 = vmul.f32 %v784_v54, %v2183_v18  ;;  %v1003_v35 = vsub.f32 1.0, %v787_v28  ;;  %v1009_v45 = vmul.f32 %v787_v28, %v2183_v18 }
 0x2a2   : > { %v2318_v56 = vpop.permute.xlu0 %780  ;;  %1471 = vmatmul.mubr.f32.vlgmr.msra.gmra.mrb[6].mxu1 %v790_v55 }
 0x2a3   : > { %v785_v21 = vsel %vm777_vm2, %v2318_v56, %v2298_v49  ;;  %1473 = vmatprep.mubr.msk.f32.mxu1 %vm1871_vm1, %v1869_v0  ;;  %v788_v36 = vsel %vm777_vm2, %v2298_v49, %v2318_v56 }
 0x2a4   : > { %v791_v29 = vmul.f32 %v785_v21, %v2188_v19  ;;  %v1004_v48 = vsub.f32 1.0, %v788_v36  ;;  %v1010_v59 = vmul.f32 %v788_v36, %v2188_v19 }
 0x2a6   : > { %1474 = vmatmul.mubr.f32.gmra.mrb[8].mxu1 %v791_v29  ;;  %v2327_v38 = vpop.permute.xlu1 %782  ;;  %v1018_v6 = vpop.permute.xlu0 %1017 }
 0x2a7   : > { %v786_v22 = vsel %vm777_vm2, %v2327_v38, %v2301_v50  ;;  %1476 = vmatprep.mubr.msk.f32.mxu1 %vm1871_vm1, %v1869_v0  ;;  %v1028_v8 = vsel %vm1024_vm3, %v1018_v6, 0.0  ;;  %v789_v49 = vsel %vm777_vm2, %v2301_v50, %v2327_v38 }
 0x2a8   : > { %v792_v57 = vmul.f32 %v786_v22, %v2192_v20  ;;  %1029 = vadd.xlane.f32.xlu1 %v1028_v8  ;;  %v1005_v62 = vsub.f32 1.0, %v789_v49  ;;  %v1011_v4 = vmul.f32 %v789_v49, %v2192_v20 }
 0x2aa   : > { %1477 = vmatmul.mubr.f32.gmra.mrb[10].mxu1 %v792_v57  ;;  %v1016_v5 = vpop.permute.xlu1 %1015 }
 0x2ab   : > { %v1025_v7 = vsel %vm1024_vm3, %v1016_v5, 0.0 }
 0x2ac   : > { %1026 = vadd.xlane.f32.xlu0 %v1025_v7 }
 0x2ae   : > { %v1020_v9 = vpop.permute.xlu1 %1019 }
 0x2af   : > { %v1031_v10 = vsel %vm1024_vm3, %v1020_v9, 0.0 }
 0x2b0   : > { %1032 = vadd.xlane.f32.xlu0 %v1031_v10 }
 0x335   : > { %v1030_v26 = vpop.xlane.xlu1 %1029 }
 0x336   : > { %vm1035_vm6 = vcmp.gt.f32.partialorder %v1030_v26, 0.0 }
 0x337   : > { %v1333_v44 = vsel %vm1035_vm6, 1.0, %v1869_v0 }
 0x338   : > { %v1047_v21 = vsub.f32 1.0, %v1333_v44 }
 0x375   : > { %v875_v11 = vpop.f32.mrb[6].mxu1 }
 0x376   : > { %v876_v12 = vadd.f32 %v875_v11, %v2224_v43  ;;  %v1472_v13 = vpop.f32.mrb[7].mxu1 }
 0x378   : > { %1736 = vtanh.f32 %v876_v12 }
 0x379   : > { %v880_v1 = vpop.f32.mrb[8].mxu1 }
 0x37a   : > { %v881_v14 = vadd.f32 %v880_v1, %v2226_v47  ;;  %v1475_v15 = vpop.f32.mrb[9].mxu1  ;;  %v1027_v47 = vpop.xlane.xlu0 %1026 }
 0x37b   : > { %vm1034_vm5 = vcmp.gt.f32.partialorder %v1027_v47, 0.0 }
 0x37c   : > { %1738 = vtanh.f32 %v881_v14  ;;  %v1332_v32 = vsel %vm1034_vm5, 1.0, %v1869_v0 }
 0x37d   : > { %v885_v16 = vpop.f32.mrb[10].mxu1  ;;  %v1046_v39 = vsub.f32 1.0, %v1332_v32 }
 0x37e   : > { %v886_v17 = vadd.f32 %v885_v16, %v2228_v51  ;;  %v1478_v23 = vpop.f32.mrb[11].mxu1  ;;  %v1328_v51 = vld [vmem:[%s2431_s8] ss:$0 sm:$0xff]  ;;  %v1033_v34 = vpop.xlane.xlu0 %1032 }
 0x37f   : > { %vm1036_vm7 = vcmp.gt.f32.partialorder %v1033_v34, 0.0  ;;  %v1049_v55 = vmul.f32 %v1046_v39, %v2183_v18  ;;  %v1050_v18 = vmul.f32 %v1047_v21, %v2188_v19 }
 0x380   : > { %1740 = vtanh.f32 %v886_v17  ;;  %v1334_v58 = vsel %vm1036_vm7, 1.0, %v1869_v0 }
 0x381   : > { %v1048_v2 = vsub.f32 1.0, %v1334_v58 }
 0x382   : > { %v1737_v24 = vpop.eup %1736 }
 0x383   : > { %1496 = vmatmul.mubr.msk.f32.vlgmr.msra.gmra.mrb[6].mxu0 %vm907_vm4, %v1737_v24  ;;  %v1051_v10 = vmul.f32 %v1048_v2, %v2192_v20 }
 0x384   : > { %1498 = vmatprep.mubr.msk.f32.mxu0 %vm1871_vm1, %v1869_v0 }
 0x386   : > { %v1739_v25 = vpop.eup %1738 }
 0x387   : > { %1499 = vmatmul.mubr.msk.f32.gmra.mrb[8].mxu0 %vm907_vm4, %v1739_v25 }
 0x388   : > { %1501 = vmatprep.mubr.msk.f32.mxu0 %vm1871_vm1, %v1869_v0 }
 0x38a   : > { %v1741_v43 = vpop.eup %1740 }
 0x38b   : > { %1502 = vmatmul.mubr.msk.f32.gmra.mrb[10].mxu0 %vm907_vm4, %v1741_v43 }
 0x456   : > { %v983_v27 = vpop.f32.mrb[6].mxu0 }
 0x457   : > { %v984_v30 = vadd.f32 %v1328_v51, %v983_v27  ;;  %v1497_v31 = vpop.f32.mrb[7].mxu0 }
 0x459   : > { %v997_v33 = vand.u32 2147483647, %v984_v30 }
 0x45a   : > { %v988_v37 = vpop.f32.mrb[8].mxu0 }
 0x45b   : > { %v1000_v40 = vsel %vm777_vm2, %v984_v30, %v997_v33  ;;  %v989_v41 = vadd.f32 %v1328_v51, %v988_v37  ;;  %v1500_v42 = vpop.f32.mrb[9].mxu0 }
 0x45c   : > { %v1006_v46 = vmul.f32 %v1003_v35, %v1000_v40 }
 0x45d   : > { %v998_v53 = vand.u32 2147483647, %v989_v41 }
 0x45e   : > { %v1012_v54 = vadd.f32 %v1009_v45, %v1006_v46  ;;  %v993_v56 = vpop.f32.mrb[10].mxu0 }
 0x45f   : > { %v1001_v29 = vsel %vm777_vm2, %v989_v41, %v998_v53  ;;  %v994_v22 = vadd.f32 %v1328_v51, %v993_v56  ;;  %v1503_v57 = vpop.f32.mrb[11].mxu0 }
 0x460   : > { %v1043_v60 = vmul.f32 %v1332_v32, %v1012_v54  ;;  %v1007_v61 = vmul.f32 %v1004_v48, %v1001_v29 }
 0x461   : > { %v999_v63 = vand.u32 2147483647, %v994_v22 }
 0x462   : > { %v1052_v50 = vadd.f32 %v1049_v55, %v1043_v60  ;;  %v1013_v38 = vadd.f32 %v1010_v59, %v1007_v61 }
 0x463   : > { %v1002_v3 = vsel %vm777_vm2, %v994_v22, %v999_v63 }
 0x464   : > { %v1055_v5 = vand.u32 2147483647, %v1052_v50  ;;  %v1044_v6 = vmul.f32 %v1333_v44, %v1013_v38  ;;  %v1008_v0 = vmul.f32 %v1005_v62, %v1002_v3 }
 0x466   : > { %v1058_v7 = vsel %vm777_vm2, %v1052_v50, %v1055_v5  ;;  %v1053_v8 = vadd.f32 %v1050_v18, %v1044_v6  ;;  %v1014_v9 = vadd.f32 %v1011_v4, %v1008_v0 }
 0x467   : > { %1061 = vst [vmem:[%s2378_s11] sm:$0xff] %v1058_v7 }
 0x468   : > { %v1056_v19 = vand.u32 2147483647, %v1053_v8  ;;  %v1045_v11 = vmul.f32 %v1334_v58, %v1014_v9 }
 0x469   : > { %1070 = sbr.rel (!%p2441_p6) target bundleno = 1197 (0x4ad), region = 64 }
 0x46a   : > { %v1059_v12 = vsel %vm777_vm2, %v1053_v8, %v1056_v19  ;;  %v1054_v13 = vadd.f32 %v1051_v10, %v1045_v11 }
 0x46b   : > { %1062 = vst [vmem:[%s2378_s11 + $0x8] sm:$0xff] %v1059_v12 }
 0x46c   : > { %v1057_v1 = vand.u32 2147483647, %v1054_v13 }
 0x46e   : > { %v1060_v14 = vsel %vm777_vm2, %v1054_v13, %v1057_v1 }
 0x46f   : > { %1063 = vst [vmem:[%s2378_s11 + $0x10] sm:$0xff] %v1060_v14 }
 0x470   : > { %s2446_s15 = smov (!%p1073_p7, %s1072_s15), 3 }
 0x471   : > { %s1335_s14 = sshll.u32 %s2446_s15, 7 }
 0x472   : > { %p1338_p9 = scmp.eq.s32.totalorder %s1335_s14, 0 }
 0x473   : > { %1742 = sdivrem.u32 (!%p1338_p9), %s2446_s15, 3 }
 0x474   : > { %1081 = sbr.rel (%p1338_p9) target bundleno = 1197 (0x4ad), region = 68 }
 0x47c   : > { %s2400_s17 = spop.drf %1742 }
 0x47d   : > { %p1339_p13 = scmp.le.s32.totalorder %s2400_s17, 0 }
 0x47e   : > { %s1834_s12 = smov (!%p1339_p13), %s2394_s20   ;;  %s1838_s22 = smov (!%p1339_p13), %s2378_s11  }
 0x47f   : > { %1254 = sbr.rel (%p1339_p13) target bundleno = 1168 (0x490), region = 148  ;;  %s1842_s21 = smov (!%p1339_p13), 0  }
 0x480   : > { %s1846_s23 = smov (!%p1339_p13), 0  }
 0x486 LB: >> { %v1149_v20 = vld [vmem:[%s1840_s22] sm:$0xff]  ;;  %v1151_v52 = vld [vmem:[%s1840_s22 + $0x8] sm:$0xff]  ;;  %v1153_v15 = vld [vmem:[%s1840_s22 + $0x10] sm:$0xff]  ;;  %s1155_s24 = sadd.s32 1, %s1844_s21  ;;  %s1143_s23 = sadd.s32 1, %s1848_s23   ;;  %s1848_s23 = sphi %s1846_s23, %s1143_s23   ;;  %s1844_s21 = sphi %s1842_s21, %s1843_s21   ;;  %s1840_s22 = sphi %s1838_s22, %s1160_s22   ;;  %s1836_s12 = sphi %s1834_s12, %s1161_s12  }
 0x487   : >> { %1150 = vst [vmem:[%s1836_s12] sm:$0xff] %v1149_v20  ;;  %1152 = vst [vmem:[%s1836_s12 + $0x8] sm:$0xff] %v1151_v52  ;;  %p1156_p0 = scmp.ge.s32.totalorder %s1155_s24, %s2400_s17  ;;  %p1142_p1 = scmp.ge.s32.totalorder %s1143_s23, %s2400_s17 }
 0x488   : >> { %1154 = vst [vmem:[%s1836_s12 + $0x10] sm:$0xff] %v1153_v15 }
 0x489   : >> { %s2448_s24 = smov (%p1156_p0, %s1155_s24), 0  ;;  %1145 = sbr.rel (!%p1142_p1) target bundleno = 1158 (0x486), region = 154 }
 0x48a   : >> { %s1158_s25 = smul.u32 24, %s2448_s24  ;;  %s1843_s21 = smov %s2448_s24  }
 0x48c   : >> { %s1160_s22 = scalar_lea.vmem %s2378_s11, %s1158_s25 [#allocation4]   ;;  %s1161_s12 = scalar_lea.vmem %s2394_s20, %s1158_s25  }
 0x490 PF: > { %1744 = sdivrem.u32 %s2446_s15, 3 }
 0x491   : > { %s1340_s27 = smul.u32 24, %s2400_s17 }
 0x493   : > { %s1166_s28 = scalar_lea.vmem %s2378_s11, %s1340_s27 [#allocation4]   ;;  %s1168_s29 = scalar_lea.vmem %s2394_s20, %s1340_s27  }
 0x499   : > { %s1745_s30 = spop.drf %1744 }
 0x49a   : > { %p1342_p2 = scmp.le.s32.totalorder %s1745_s30, 0 }
 0x49b   : > { %s1850_s19 = smov (!%p1342_p2), %s1168_s29   ;;  %s1854_s18 = smov (!%p1342_p2), %s1166_s28  }
 0x49c   : > { %1268 = sbr.rel (%p1342_p2) target bundleno = 1197 (0x4ad), region = 159  ;;  %s1858_s26 = smov (!%p1342_p2), 0  }
 0x49d   : > { %s1862_s14 = smov (!%p1342_p2), 0  }
 0x4a3 LB: >> { %v1178_v16 = vld [vmem:[%s1856_s18] sm:$0xff]  ;;  %s1180_s12 = sadd.s32 1, %s1860_s26  ;;  %s1172_s14 = sadd.s32 1, %s1864_s14   ;;  %s1864_s14 = sphi %s1862_s14, %s1172_s14   ;;  %s1860_s26 = sphi %s1858_s26, %s1859_s26   ;;  %s1856_s18 = sphi %s1854_s18, %s1185_s18   ;;  %s1852_s19 = sphi %s1850_s19, %s1186_s19  }
 0x4a4   : >> { %1179 = vst [vmem:[%s1852_s19] sm:$0xff] %v1178_v16  ;;  %p1181_p3 = scmp.ge.s32.totalorder %s1180_s12, %s1745_s30  ;;  %p1171_p5 = scmp.ge.s32.totalorder %s1172_s14, %s1745_s30 }
 0x4a6   : >> { %s2450_s12 = smov (%p1181_p3, %s1180_s12), 0  ;;  %1174 = sbr.rel (!%p1171_p5) target bundleno = 1187 (0x4a3), region = 165 }
 0x4a7   : >> { %s1343_s11 = sshll.u32 %s2450_s12, 3  ;;  %s1859_s26 = smov %s2450_s12  }
 0x4a8   : >> { %s1185_s18 = scalar_lea.vmem %s1166_s28, %s1343_s11 [#allocation4]   ;;  %s1186_s19 = scalar_lea.vmem %s1168_s29, %s1343_s11  }
 0x4ad PF: > { %p17_p8 = scmp.ge.s32.totalorder %s1939_s13, 4   ;;  %s2442_s30 = smov %s1828_s10 }
 0x4ae   : > { %s2443_s10 = smov %s1947_s16  ;;  %s2444_s11 = smov %s1939_s13 }
 0x4af   :  { %19 = sbr.rel (!%p17_p8) target bundleno = 2 (0x2), region = 176 }
 0x4b6   :  { %1202 = vsyncpa [#allocation3], 1 }
 0x4b7   :  { %1204 = vsyncpa [#allocation3 + $0x1], 1 }

</bundles_post_ra>
